<compile_context>
chip_gen: v5e
topology: v5e:2x2
jax: 0.10.0
libtpu: 0.0.40
codegen_flags: <defaults>
</compile_context>

<pallas_src>
import functools

import jax
import jax.numpy as jnp
from jax import lax
from jax.experimental import pallas as pl
from jax.experimental.pallas import tpu as pltpu


def _round_up(n, m):
    return ((n + m - 1) // m) * m


def _rnn_kernel(ids_ref,      # VMEM (T*Bp, 1) int32 token ids (time-major)
                h0_ref,       # VMEM (Bp, Hp) initial hidden state
                wih_t_ref,    # VMEM (Vp, Hp) = W_ih^T (zero padded)
                whh_t_ref,    # VMEM (Hp, Hp) = W_hh^T (zero padded)
                bias_ref,     # VMEM (1, Hp)  = b_ih + b_hh (zero padded)
                wd_t_ref,     # VMEM (Hp, Vp) = W_d^T (zero padded)
                bd_ref,       # VMEM (1, Vp)  = b_d (zero padded)
                out_ref,      # VMEM (T*Bp, Vp) logits (single write)
                hstate_ref,   # VMEM (Bp, Hp) final hidden state (single write)
                slab_ref):    # VMEM scratch (T, Bp, Hp): holds x_all, then h_t per slot
    TB = ids_ref.shape[0]
    Bp, Hp = h0_ref.shape
    T = TB // Bp
    Vp = wih_t_ref.shape[0]
    f32 = jnp.float32

    # ---- Input projection, hoisted out of the recurrence (no dependence on h). ----
    # one-hot via iota == ids, one big MXU matmul, bias folded in once.
    iota = lax.broadcasted_iota(jnp.int32, (TB, Vp), 1)
    onehot = (iota == ids_ref[...]).astype(f32)                       # (T*Bp, Vp)
    x_all = (jnp.dot(onehot, wih_t_ref[...], preferred_element_type=f32)
             + bias_ref[...])                                          # (T*Bp, Hp)
    slab_ref[...] = x_all.reshape(T, Bp, Hp)

    whh_t = whh_t_ref[...]                                             # hoisted

    # ---- Sequential recurrence: per step just one tiny matmul + tanh. ----
    def step(t, h_prev):
        x_t = slab_ref[t]                                              # (Bp, Hp)
        h_new = jnp.tanh(
            x_t + jnp.dot(h_prev, whh_t, preferred_element_type=f32))
        slab_ref[t] = h_new        # overwrite x slot with h_t (slab reused by head)
        return h_new

    h_final = lax.fori_loop(0, T, step, h0_ref[...], unroll=min(T, 8))
    hstate_ref[...] = h_final.astype(hstate_ref.dtype)

    # ---- Dense head: one batched lane-dense matmul, single output write. ----
    hs_all = slab_ref[...].reshape(TB, Hp)
    out_ref[...] = (jnp.dot(hs_all, wd_t_ref[...],
                            preferred_element_type=f32)
                    + bd_ref[...]).astype(out_ref.dtype)


def rnn_model_forward(inputs, state, params, vocab_size):
    """
    inputs: (B, T) int32 token ids
    state:  (1, B, H) float32 initial hidden state
    returns (output (T*B, V), state (1, B, H)) matching RNNModel.forward.
    """
    w_ih, w_hh, b_ih, b_hh, w_d, b_d = params
    B, T = inputs.shape
    H = w_hh.shape[0]
    V = vocab_size

    # Sublane/lane aligned padded sizes (8 sublanes, 128 lanes).
    Bp = _round_up(B, 8)
    Hp = _round_up(H, 128)
    Vp = _round_up(V, 128)
    f32 = jnp.float32

    # Time-major ids as a (T*Bp, 1) VMEM column; pad batch rows get -1, whose
    # one-hot row is all zeros (their outputs are sliced off; batch rows never mix).
    ids = jnp.full((T, Bp), -1, jnp.int32).at[:, :B].set(inputs.T.astype(jnp.int32))
    ids = ids.reshape(T * Bp, 1)

    # Pre-transposed, zero-padded weights (layout plumbing done once on the host).
    wih_t = jnp.zeros((Vp, Hp), f32).at[:V, :H].set(w_ih.T)
    whh_t = jnp.zeros((Hp, Hp), f32).at[:H, :H].set(w_hh.T)
    bias = jnp.zeros((1, Hp), f32).at[0, :H].set(b_ih + b_hh)
    wd_t = jnp.zeros((Hp, Vp), f32).at[:H, :V].set(w_d.T)
    bd = jnp.zeros((1, Vp), f32).at[0, :V].set(b_d)
    h0 = jnp.zeros((Bp, Hp), f32).at[:B, :H].set(state[0])

    out_pad, h_last = pl.pallas_call(
        _rnn_kernel,
        out_shape=(
            jax.ShapeDtypeStruct((T * Bp, Vp), f32),
            jax.ShapeDtypeStruct((Bp, Hp), f32),
        ),
        grid_spec=pltpu.PrefetchScalarGridSpec(
            num_scalar_prefetch=0,
            grid=(1,),                             # whole problem is one resident step
            in_specs=[
                pl.BlockSpec((T * Bp, 1), lambda i: (0, 0)),        # ids
                pl.BlockSpec((Bp, Hp), lambda i: (0, 0)),           # h0
                pl.BlockSpec((Vp, Hp), lambda i: (0, 0)),           # W_ih^T
                pl.BlockSpec((Hp, Hp), lambda i: (0, 0)),           # W_hh^T
                pl.BlockSpec((1, Hp), lambda i: (0, 0)),            # fused bias
                pl.BlockSpec((Hp, Vp), lambda i: (0, 0)),           # W_d^T
                pl.BlockSpec((1, Vp), lambda i: (0, 0)),            # b_d
            ],
            out_specs=[
                pl.BlockSpec((T * Bp, Vp), lambda i: (0, 0)),       # logits
                pl.BlockSpec((Bp, Hp), lambda i: (0, 0)),           # final hidden state
            ],
            scratch_shapes=[pltpu.VMEM((T, Bp, Hp), f32)],          # x_all / h slab
        ),
        compiler_params=pltpu.CompilerParams(
            dimension_semantics=("arbitrary",),    # time recurrence is sequential
        ),
    )(ids, h0, wih_t, whh_t, bias, wd_t, bd)

    # Strip padding; match PyTorch's (T*B, V) row ordering (time-major).
    output = out_pad.reshape(T, Bp, Vp)[:, :B, :V].reshape(T * B, V)
    new_state = h_last[:B, :H][None, :, :]
    return output, new_state


def init_params(key, vocab_size, hidden_size):
    """Deterministic init mirroring PyTorch default U(-1/sqrt(H), 1/sqrt(H))."""
    ks = jax.random.split(key, 6)
    bound = 1.0 / jnp.sqrt(hidden_size)
    w_ih = jax.random.uniform(ks[0], (hidden_size, vocab_size), jnp.float32, -bound, bound)
    w_hh = jax.random.uniform(ks[1], (hidden_size, hidden_size), jnp.float32, -bound, bound)
    b_ih = jax.random.uniform(ks[2], (hidden_size,), jnp.float32, -bound, bound)
    b_hh = jax.random.uniform(ks[3], (hidden_size,), jnp.float32, -bound, bound)
    w_d = jax.random.uniform(ks[4], (vocab_size, hidden_size), jnp.float32, -bound, bound)
    b_d = jax.random.uniform(ks[5], (vocab_size,), jnp.float32, -bound, bound)
    return (w_ih, w_hh, b_ih, b_hh, w_d, b_d)


def _reference_forward(inputs, state, params, vocab_size):
    """Pure-JAX reference for a sanity check."""
    w_ih, w_hh, b_ih, b_hh, w_d, b_d = params
    x = jax.nn.one_hot(inputs.T, vocab_size, dtype=jnp.float32)  # (T, B, V)
    h = state[0]
    ys = []
    for t in range(x.shape[0]):
        h = jnp.tanh(x[t] @ w_ih.T + b_ih + h @ w_hh.T + b_hh)
        ys.append(h)
    y = jnp.stack(ys)                                            # (T, B, H)
    out = y.reshape(-1, y.shape[-1]) @ w_d.T + b_d
    return out, h[None]


if __name__ == "__main__":
    # Small shapes implied by the forward: batch=4, seq=8, vocab=32, hidden=32.
    B, T, V, H = 4, 8, 32, 32

    key = jax.random.PRNGKey(0)
    k_tok, k_state, k_param = jax.random.split(key, 3)

    inputs = jax.random.randint(k_tok, (B, T), 0, V, dtype=jnp.int32)
    state = jax.random.normal(k_state, (1, B, H), jnp.float32)
    params = init_params(k_param, V, H)

    fwd = jax.jit(functools.partial(rnn_model_forward, vocab_size=V))
    out, new_state = fwd(inputs, state, params)
    out = jax.block_until_ready(out)
    new_state = jax.block_until_ready(new_state)

    # Sanity check against pure-JAX reference.
    ref_out, ref_state = _reference_forward(inputs, state, params, V)
    assert out.shape == (T * B, V)
    assert new_state.shape == (1, B, H)
    assert jnp.allclose(out, ref_out, atol=1e-4, rtol=1e-4)
    assert jnp.allclose(new_state, ref_state, atol=1e-4, rtol=1e-4)

    print("KERNEL_OK")
</pallas_src>

<mosaic_0001>
module attributes {stable_mosaic.version = 11 : i64} {
  func.func @_rnn_kernel(%arg0: i32, %arg1: memref<64x1xi32, #tpu.memory_space<vmem>>, %arg2: memref<8x128xf32, #tpu.memory_space<vmem>>, %arg3: memref<128x128xf32, #tpu.memory_space<vmem>>, %arg4: memref<128x128xf32, #tpu.memory_space<vmem>>, %arg5: memref<1x128xf32, #tpu.memory_space<vmem>>, %arg6: memref<128x128xf32, #tpu.memory_space<vmem>>, %arg7: memref<1x128xf32, #tpu.memory_space<vmem>>, %arg8: memref<64x128xf32, #tpu.memory_space<vmem>>, %arg9: memref<8x128xf32, #tpu.memory_space<vmem>>, %arg10: memref<8x8x128xf32, #tpu.memory_space<vmem>>) attributes {dimension_semantics = [#tpu.dimension_semantics<arbitrary>], iteration_bounds = array<i64: 1>, scalar_prefetch = 0 : i64, scratch_operands = 1 : i64, tpu.core_type = #tpu.core_type<tc>, window_params = [{pipeline_mode = #tpu.pipeline_mode<synchronous>, transform_indices = @transform_0, window_bounds = array<i64: 64, 1>}, {pipeline_mode = #tpu.pipeline_mode<synchronous>, transform_indices = @transform_1, window_bounds = array<i64: 8, 128>}, {pipeline_mode = #tpu.pipeline_mode<synchronous>, transform_indices = @transform_2, window_bounds = array<i64: 128, 128>}, {pipeline_mode = #tpu.pipeline_mode<synchronous>, transform_indices = @transform_3, window_bounds = array<i64: 128, 128>}, {pipeline_mode = #tpu.pipeline_mode<synchronous>, transform_indices = @transform_4, window_bounds = array<i64: 1, 128>}, {pipeline_mode = #tpu.pipeline_mode<synchronous>, transform_indices = @transform_5, window_bounds = array<i64: 128, 128>}, {pipeline_mode = #tpu.pipeline_mode<synchronous>, transform_indices = @transform_6, window_bounds = array<i64: 1, 128>}, {pipeline_mode = #tpu.pipeline_mode<synchronous>, transform_indices = @transform_7, window_bounds = array<i64: 64, 128>}, {pipeline_mode = #tpu.pipeline_mode<synchronous>, transform_indices = @transform_8, window_bounds = array<i64: 8, 128>}]} {
    %0 = tpu.iota {dimensions = array<i32: 1>} : vector<64x128xi32>
    %c0 = arith.constant 0 : index
    %c0_0 = arith.constant 0 : index
    %1 = vector.load %arg1[%c0, %c0_0] : memref<64x1xi32, #tpu.memory_space<vmem>>, vector<64x1xi32>
    %2 = vector.broadcast %1 : vector<64x1xi32> to vector<64x128xi32>
    %3 = arith.cmpi eq, %0, %2 : vector<64x128xi32>
    %4 = arith.extui %3 : vector<64x128xi1> to vector<64x128xi32>
    %5 = arith.sitofp %4 : vector<64x128xi32> to vector<64x128xf32>
    %c0_1 = arith.constant 0 : index
    %c0_2 = arith.constant 0 : index
    %6 = vector.load %arg3[%c0_1, %c0_2] : memref<128x128xf32, #tpu.memory_space<vmem>>, vector<128x128xf32>
    %cst = arith.constant dense<0.000000e+00> : vector<64x128xf32>
    %7 = tpu.matmul %5, %6, %cst {dimension_numbers = #tpu.dot_dimension_numbers<[1], [0], [0], [1], [0, 0, 1, 1], [], []>} : vector<64x128xf32>, vector<128x128xf32>, vector<64x128xf32> -> vector<64x128xf32>
    %c0_3 = arith.constant 0 : index
    %c0_4 = arith.constant 0 : index
    %8 = vector.load %arg5[%c0_3, %c0_4] : memref<1x128xf32, #tpu.memory_space<vmem>>, vector<1x128xf32>
    %9 = vector.broadcast %8 : vector<1x128xf32> to vector<64x128xf32>
    %10 = arith.addf %7, %9 : vector<64x128xf32>
    %11 = vector.shape_cast %10 : vector<64x128xf32> to vector<8x8x128xf32>
    %c0_5 = arith.constant 0 : index
    %c0_6 = arith.constant 0 : index
    %c0_7 = arith.constant 0 : index
    %12 = vector.load %arg10[%c0_5, %c0_6, %c0_7] : memref<8x8x128xf32, #tpu.memory_space<vmem>>, vector<8x8x128xf32>
    tpu.vector_store %arg10[%c0_5, %c0_6, %c0_7], %11 {strides = array<i32>} : memref<8x8x128xf32, #tpu.memory_space<vmem>>, vector<8x8x128xf32>,
    %c0_8 = arith.constant 0 : index
    %c0_9 = arith.constant 0 : index
    %13 = vector.load %arg4[%c0_8, %c0_9] : memref<128x128xf32, #tpu.memory_space<vmem>>, vector<128x128xf32>
    %c0_10 = arith.constant 0 : index
    %c0_11 = arith.constant 0 : index
    %14 = vector.load %arg2[%c0_10, %c0_11] : memref<8x128xf32, #tpu.memory_space<vmem>>, vector<8x128xf32>
    %c0_i32 = arith.constant 0 : i32
    %15 = arith.index_cast %c0_i32 : i32 to index
    %c0_12 = arith.constant 0 : index
    %c0_13 = arith.constant 0 : index
    %16 = vector.load %arg10[%15, %c0_12, %c0_13] : memref<8x8x128xf32, #tpu.memory_space<vmem>>, vector<1x8x128xf32>
    %17 = vector.shape_cast %16 : vector<1x8x128xf32> to vector<8x128xf32>
    %cst_14 = arith.constant dense<0.000000e+00> : vector<8x128xf32>
    %18 = tpu.matmul %14, %13, %cst_14 {dimension_numbers = #tpu.dot_dimension_numbers<[1], [0], [0], [1], [0, 0, 1, 1], [], []>} : vector<8x128xf32>, vector<128x128xf32>, vector<8x128xf32> -> vector<8x128xf32>
    %19 = arith.addf %17, %18 : vector<8x128xf32>
    %20 = math.tanh %19 : vector<8x128xf32>
    %21 = arith.index_cast %c0_i32 : i32 to index
    %c0_15 = arith.constant 0 : index
    %c0_16 = arith.constant 0 : index
    %22 = vector.load %arg10[%21, %c0_15, %c0_16] : memref<8x8x128xf32, #tpu.memory_space<vmem>>, vector<1x8x128xf32>
    %23 = vector.shape_cast %22 : vector<1x8x128xf32> to vector<8x128xf32>
    %24 = vector.shape_cast %20 : vector<8x128xf32> to vector<1x8x128xf32>
    tpu.vector_store %arg10[%21, %c0_15, %c0_16], %24 {strides = array<i32>} : memref<8x8x128xf32, #tpu.memory_space<vmem>>, vector<1x8x128xf32>,
    %c1_i32 = arith.constant 1 : i32
    %25 = arith.index_cast %c1_i32 : i32 to index
    %c0_17 = arith.constant 0 : index
    %c0_18 = arith.constant 0 : index
    %26 = vector.load %arg10[%25, %c0_17, %c0_18] : memref<8x8x128xf32, #tpu.memory_space<vmem>>, vector<1x8x128xf32>
    %27 = vector.shape_cast %26 : vector<1x8x128xf32> to vector<8x128xf32>
    %cst_19 = arith.constant dense<0.000000e+00> : vector<8x128xf32>
    %28 = tpu.matmul %20, %13, %cst_19 {dimension_numbers = #tpu.dot_dimension_numbers<[1], [0], [0], [1], [0, 0, 1, 1], [], []>} : vector<8x128xf32>, vector<128x128xf32>, vector<8x128xf32> -> vector<8x128xf32>
    %29 = arith.addf %27, %28 : vector<8x128xf32>
    %30 = math.tanh %29 : vector<8x128xf32>
    %31 = arith.index_cast %c1_i32 : i32 to index
    %c0_20 = arith.constant 0 : index
    %c0_21 = arith.constant 0 : index
    %32 = vector.load %arg10[%31, %c0_20, %c0_21] : memref<8x8x128xf32, #tpu.memory_space<vmem>>, vector<1x8x128xf32>
    %33 = vector.shape_cast %32 : vector<1x8x128xf32> to vector<8x128xf32>
    %34 = vector.shape_cast %30 : vector<8x128xf32> to vector<1x8x128xf32>
    tpu.vector_store %arg10[%31, %c0_20, %c0_21], %34 {strides = array<i32>} : memref<8x8x128xf32, #tpu.memory_space<vmem>>, vector<1x8x128xf32>,
    %c2_i32 = arith.constant 2 : i32
    %35 = arith.index_cast %c2_i32 : i32 to index
    %c0_22 = arith.constant 0 : index
    %c0_23 = arith.constant 0 : index
    %36 = vector.load %arg10[%35, %c0_22, %c0_23] : memref<8x8x128xf32, #tpu.memory_space<vmem>>, vector<1x8x128xf32>
    %37 = vector.shape_cast %36 : vector<1x8x128xf32> to vector<8x128xf32>
    %cst_24 = arith.constant dense<0.000000e+00> : vector<8x128xf32>
    %38 = tpu.matmul %30, %13, %cst_24 {dimension_numbers = #tpu.dot_dimension_numbers<[1], [0], [0], [1], [0, 0, 1, 1], [], []>} : vector<8x128xf32>, vector<128x128xf32>, vector<8x128xf32> -> vector<8x128xf32>
    %39 = arith.addf %37, %38 : vector<8x128xf32>
    %40 = math.tanh %39 : vector<8x128xf32>
    %41 = arith.index_cast %c2_i32 : i32 to index
    %c0_25 = arith.constant 0 : index
    %c0_26 = arith.constant 0 : index
    %42 = vector.load %arg10[%41, %c0_25, %c0_26] : memref<8x8x128xf32, #tpu.memory_space<vmem>>, vector<1x8x128xf32>
    %43 = vector.shape_cast %42 : vector<1x8x128xf32> to vector<8x128xf32>
    %44 = vector.shape_cast %40 : vector<8x128xf32> to vector<1x8x128xf32>
    tpu.vector_store %arg10[%41, %c0_25, %c0_26], %44 {strides = array<i32>} : memref<8x8x128xf32, #tpu.memory_space<vmem>>, vector<1x8x128xf32>,
    %c3_i32 = arith.constant 3 : i32
    %45 = arith.index_cast %c3_i32 : i32 to index
    %c0_27 = arith.constant 0 : index
    %c0_28 = arith.constant 0 : index
    %46 = vector.load %arg10[%45, %c0_27, %c0_28] : memref<8x8x128xf32, #tpu.memory_space<vmem>>, vector<1x8x128xf32>
    %47 = vector.shape_cast %46 : vector<1x8x128xf32> to vector<8x128xf32>
    %cst_29 = arith.constant dense<0.000000e+00> : vector<8x128xf32>
    %48 = tpu.matmul %40, %13, %cst_29 {dimension_numbers = #tpu.dot_dimension_numbers<[1], [0], [0], [1], [0, 0, 1, 1], [], []>} : vector<8x128xf32>, vector<128x128xf32>, vector<8x128xf32> -> vector<8x128xf32>
    %49 = arith.addf %47, %48 : vector<8x128xf32>
    %50 = math.tanh %49 : vector<8x128xf32>
    %51 = arith.index_cast %c3_i32 : i32 to index
    %c0_30 = arith.constant 0 : index
    %c0_31 = arith.constant 0 : index
    %52 = vector.load %arg10[%51, %c0_30, %c0_31] : memref<8x8x128xf32, #tpu.memory_space<vmem>>, vector<1x8x128xf32>
    %53 = vector.shape_cast %52 : vector<1x8x128xf32> to vector<8x128xf32>
    %54 = vector.shape_cast %50 : vector<8x128xf32> to vector<1x8x128xf32>
    tpu.vector_store %arg10[%51, %c0_30, %c0_31], %54 {strides = array<i32>} : memref<8x8x128xf32, #tpu.memory_space<vmem>>, vector<1x8x128xf32>,
    %c4_i32 = arith.constant 4 : i32
    %55 = arith.index_cast %c4_i32 : i32 to index
    %c0_32 = arith.constant 0 : index
    %c0_33 = arith.constant 0 : index
    %56 = vector.load %arg10[%55, %c0_32, %c0_33] : memref<8x8x128xf32, #tpu.memory_space<vmem>>, vector<1x8x128xf32>
    %57 = vector.shape_cast %56 : vector<1x8x128xf32> to vector<8x128xf32>
    %cst_34 = arith.constant dense<0.000000e+00> : vector<8x128xf32>
    %58 = tpu.matmul %50, %13, %cst_34 {dimension_numbers = #tpu.dot_dimension_numbers<[1], [0], [0], [1], [0, 0, 1, 1], [], []>} : vector<8x128xf32>, vector<128x128xf32>, vector<8x128xf32> -> vector<8x128xf32>
    %59 = arith.addf %57, %58 : vector<8x128xf32>
    %60 = math.tanh %59 : vector<8x128xf32>
    %61 = arith.index_cast %c4_i32 : i32 to index
    %c0_35 = arith.constant 0 : index
    %c0_36 = arith.constant 0 : index
    %62 = vector.load %arg10[%61, %c0_35, %c0_36] : memref<8x8x128xf32, #tpu.memory_space<vmem>>, vector<1x8x128xf32>
    %63 = vector.shape_cast %62 : vector<1x8x128xf32> to vector<8x128xf32>
    %64 = vector.shape_cast %60 : vector<8x128xf32> to vector<1x8x128xf32>
    tpu.vector_store %arg10[%61, %c0_35, %c0_36], %64 {strides = array<i32>} : memref<8x8x128xf32, #tpu.memory_space<vmem>>, vector<1x8x128xf32>,
    %c5_i32 = arith.constant 5 : i32
    %65 = arith.index_cast %c5_i32 : i32 to index
    %c0_37 = arith.constant 0 : index
    %c0_38 = arith.constant 0 : index
    %66 = vector.load %arg10[%65, %c0_37, %c0_38] : memref<8x8x128xf32, #tpu.memory_space<vmem>>, vector<1x8x128xf32>
    %67 = vector.shape_cast %66 : vector<1x8x128xf32> to vector<8x128xf32>
    %cst_39 = arith.constant dense<0.000000e+00> : vector<8x128xf32>
    %68 = tpu.matmul %60, %13, %cst_39 {dimension_numbers = #tpu.dot_dimension_numbers<[1], [0], [0], [1], [0, 0, 1, 1], [], []>} : vector<8x128xf32>, vector<128x128xf32>, vector<8x128xf32> -> vector<8x128xf32>
    %69 = arith.addf %67, %68 : vector<8x128xf32>
    %70 = math.tanh %69 : vector<8x128xf32>
    %71 = arith.index_cast %c5_i32 : i32 to index
    %c0_40 = arith.constant 0 : index
    %c0_41 = arith.constant 0 : index
    %72 = vector.load %arg10[%71, %c0_40, %c0_41] : memref<8x8x128xf32, #tpu.memory_space<vmem>>, vector<1x8x128xf32>
    %73 = vector.shape_cast %72 : vector<1x8x128xf32> to vector<8x128xf32>
    %74 = vector.shape_cast %70 : vector<8x128xf32> to vector<1x8x128xf32>
    tpu.vector_store %arg10[%71, %c0_40, %c0_41], %74 {strides = array<i32>} : memref<8x8x128xf32, #tpu.memory_space<vmem>>, vector<1x8x128xf32>,
    %c6_i32 = arith.constant 6 : i32
    %75 = arith.index_cast %c6_i32 : i32 to index
    %c0_42 = arith.constant 0 : index
    %c0_43 = arith.constant 0 : index
    %76 = vector.load %arg10[%75, %c0_42, %c0_43] : memref<8x8x128xf32, #tpu.memory_space<vmem>>, vector<1x8x128xf32>
    %77 = vector.shape_cast %76 : vector<1x8x128xf32> to vector<8x128xf32>
    %cst_44 = arith.constant dense<0.000000e+00> : vector<8x128xf32>
    %78 = tpu.matmul %70, %13, %cst_44 {dimension_numbers = #tpu.dot_dimension_numbers<[1], [0], [0], [1], [0, 0, 1, 1], [], []>} : vector<8x128xf32>, vector<128x128xf32>, vector<8x128xf32> -> vector<8x128xf32>
    %79 = arith.addf %77, %78 : vector<8x128xf32>
    %80 = math.tanh %79 : vector<8x128xf32>
    %81 = arith.index_cast %c6_i32 : i32 to index
    %c0_45 = arith.constant 0 : index
    %c0_46 = arith.constant 0 : index
    %82 = vector.load %arg10[%81, %c0_45, %c0_46] : memref<8x8x128xf32, #tpu.memory_space<vmem>>, vector<1x8x128xf32>
    %83 = vector.shape_cast %82 : vector<1x8x128xf32> to vector<8x128xf32>
    %84 = vector.shape_cast %80 : vector<8x128xf32> to vector<1x8x128xf32>
    tpu.vector_store %arg10[%81, %c0_45, %c0_46], %84 {strides = array<i32>} : memref<8x8x128xf32, #tpu.memory_space<vmem>>, vector<1x8x128xf32>,
    %c7_i32 = arith.constant 7 : i32
    %85 = arith.index_cast %c7_i32 : i32 to index
    %c0_47 = arith.constant 0 : index
    %c0_48 = arith.constant 0 : index
    %86 = vector.load %arg10[%85, %c0_47, %c0_48] : memref<8x8x128xf32, #tpu.memory_space<vmem>>, vector<1x8x128xf32>
    %87 = vector.shape_cast %86 : vector<1x8x128xf32> to vector<8x128xf32>
    %cst_49 = arith.constant dense<0.000000e+00> : vector<8x128xf32>
    %88 = tpu.matmul %80, %13, %cst_49 {dimension_numbers = #tpu.dot_dimension_numbers<[1], [0], [0], [1], [0, 0, 1, 1], [], []>} : vector<8x128xf32>, vector<128x128xf32>, vector<8x128xf32> -> vector<8x128xf32>
    %89 = arith.addf %87, %88 : vector<8x128xf32>
    %90 = math.tanh %89 : vector<8x128xf32>
    %91 = arith.index_cast %c7_i32 : i32 to index
    %c0_50 = arith.constant 0 : index
    %c0_51 = arith.constant 0 : index
    %92 = vector.load %arg10[%91, %c0_50, %c0_51] : memref<8x8x128xf32, #tpu.memory_space<vmem>>, vector<1x8x128xf32>
    %93 = vector.shape_cast %92 : vector<1x8x128xf32> to vector<8x128xf32>
    %94 = vector.shape_cast %90 : vector<8x128xf32> to vector<1x8x128xf32>
    tpu.vector_store %arg10[%91, %c0_50, %c0_51], %94 {strides = array<i32>} : memref<8x8x128xf32, #tpu.memory_space<vmem>>, vector<1x8x128xf32>,
    %c8_i32 = arith.constant 8 : i32
    %c0_52 = arith.constant 0 : index
    %c0_53 = arith.constant 0 : index
    %95 = vector.load %arg9[%c0_52, %c0_53] : memref<8x128xf32, #tpu.memory_space<vmem>>, vector<8x128xf32>
    tpu.vector_store %arg9[%c0_52, %c0_53], %90 {strides = array<i32>} : memref<8x128xf32, #tpu.memory_space<vmem>>, vector<8x128xf32>,
    %c0_54 = arith.constant 0 : index
    %c0_55 = arith.constant 0 : index
    %c0_56 = arith.constant 0 : index
    %96 = vector.load %arg10[%c0_54, %c0_55, %c0_56] : memref<8x8x128xf32, #tpu.memory_space<vmem>>, vector<8x8x128xf32>
    %97 = vector.shape_cast %96 : vector<8x8x128xf32> to vector<64x128xf32>
    %c0_57 = arith.constant 0 : index
    %c0_58 = arith.constant 0 : index
    %98 = vector.load %arg6[%c0_57, %c0_58] : memref<128x128xf32, #tpu.memory_space<vmem>>, vector<128x128xf32>
    %cst_59 = arith.constant dense<0.000000e+00> : vector<64x128xf32>
    %99 = tpu.matmul %97, %98, %cst_59 {dimension_numbers = #tpu.dot_dimension_numbers<[1], [0], [0], [1], [0, 0, 1, 1], [], []>} : vector<64x128xf32>, vector<128x128xf32>, vector<64x128xf32> -> vector<64x128xf32>
    %c0_60 = arith.constant 0 : index
    %c0_61 = arith.constant 0 : index
    %100 = vector.load %arg7[%c0_60, %c0_61] : memref<1x128xf32, #tpu.memory_space<vmem>>, vector<1x128xf32>
    %101 = vector.broadcast %100 : vector<1x128xf32> to vector<64x128xf32>
    %102 = arith.addf %99, %101 : vector<64x128xf32>
    %c0_62 = arith.constant 0 : index
    %c0_63 = arith.constant 0 : index
    %103 = vector.load %arg8[%c0_62, %c0_63] : memref<64x128xf32, #tpu.memory_space<vmem>>, vector<64x128xf32>
    tpu.vector_store %arg8[%c0_62, %c0_63], %102 {strides = array<i32>} : memref<64x128xf32, #tpu.memory_space<vmem>>, vector<64x128xf32>,
    return
  }
  func.func @transform_0(%arg0: i32) -> (i32, i32) {
    %c0_i32 = arith.constant 0 : i32
    %c0_i32_0 = arith.constant 0 : i32
    %c0_i32_1 = arith.constant 0 : i32
    return %c0_i32, %c0_i32_0 : i32, i32
  }
  func.func @transform_1(%arg0: i32) -> (i32, i32) {
    %c0_i32 = arith.constant 0 : i32
    %c0_i32_0 = arith.constant 0 : i32
    %c0_i32_1 = arith.constant 0 : i32
    return %c0_i32, %c0_i32_0 : i32, i32
  }
  func.func @transform_2(%arg0: i32) -> (i32, i32) {
    %c0_i32 = arith.constant 0 : i32
    %c0_i32_0 = arith.constant 0 : i32
    %c0_i32_1 = arith.constant 0 : i32
    return %c0_i32, %c0_i32_0 : i32, i32
  }
  func.func @transform_3(%arg0: i32) -> (i32, i32) {
    %c0_i32 = arith.constant 0 : i32
    %c0_i32_0 = arith.constant 0 : i32
    %c0_i32_1 = arith.constant 0 : i32
    return %c0_i32, %c0_i32_0 : i32, i32
  }
  func.func @transform_4(%arg0: i32) -> (i32, i32) {
    %c0_i32 = arith.constant 0 : i32
    %c0_i32_0 = arith.constant 0 : i32
    %c0_i32_1 = arith.constant 0 : i32
    return %c0_i32, %c0_i32_0 : i32, i32
  }
  func.func @transform_5(%arg0: i32) -> (i32, i32) {
    %c0_i32 = arith.constant 0 : i32
    %c0_i32_0 = arith.constant 0 : i32
    %c0_i32_1 = arith.constant 0 : i32
    return %c0_i32, %c0_i32_0 : i32, i32
  }
  func.func @transform_6(%arg0: i32) -> (i32, i32) {
    %c0_i32 = arith.constant 0 : i32
    %c0_i32_0 = arith.constant 0 : i32
    %c0_i32_1 = arith.constant 0 : i32
    return %c0_i32, %c0_i32_0 : i32, i32
  }
  func.func @transform_7(%arg0: i32) -> (i32, i32) {
    %c0_i32 = arith.constant 0 : i32
    %c0_i32_0 = arith.constant 0 : i32
    %c0_i32_1 = arith.constant 0 : i32
    return %c0_i32, %c0_i32_0 : i32, i32
  }
  func.func @transform_8(%arg0: i32) -> (i32, i32) {
    %c0_i32 = arith.constant 0 : i32
    %c0_i32_0 = arith.constant 0 : i32
    %c0_i32_1 = arith.constant 0 : i32
    return %c0_i32, %c0_i32_0 : i32, i32
  }
}

</mosaic_0001>

<bundles_post_ra>
// kernel: rnn_model_forward.1
= control target key start
LH: loop header
LB: loop body
LE: loop exit
PB: predicated region body
PF: predicated region fallthrough
CT: control target
= control target key end

     0   :  { %v496_v0 = vmov 0   ;;  %v28_v41 = vlaneseq  ;;  %v497_v44 = vmov 1.0   ;;  %s939_s0 = inlined_call_operand.vmem [shape: s32[64,1], index: 0, kind: input, shape index: {}]   ;;  %s940_s2 = inlined_call_operand.vmem [shape: f32[128,128], index: 2, kind: input, shape index: {}]   ;;  %s941_s3 = inlined_call_operand.vmem [shape: f32[128,128], index: 3, kind: input, shape index: {}]   ;;  %s942_s4 = inlined_call_operand.vmem [shape: f32[1,128], index: 4, kind: input, shape index: {}]   ;;  %s943_s1 = inlined_call_operand.vmem [shape: f32[8,128], index: 1, kind: input, shape index: {}]   ;;  %s944_s5 = inlined_call_operand.vmem [shape: f32[128,128], index: 5, kind: input, shape index: {}]   ;;  %s945_s6 = inlined_call_operand.vmem [shape: f32[1,128], index: 6, kind: input, shape index: {}]   ;;  %s946_s7 = inlined_call_operand.vmem [shape: f32[64,128], index: 7, kind: output, shape index: {0}]   ;;  %s947_s8 = inlined_call_operand.vmem [shape: f32[8,128], index: 8, kind: output, shape index: {1}]  }
   0x1   :  { %475 = vset.pattern.permute.xlu0 %v496_v0  ;;  %v30_v1 = vld [vmem:[%s939_s0] sm:$0xff]  ;;  %476 = vset.pattern.permute.xlu1 %v496_v0  ;;  %v32_v2 = vld [vmem:[%s939_s0 + $0x10] sm:$0xff]  ;;  %v101_v4 = vld [vmem:[%s940_s2 + $0x78] sm:$0xff] }
   0x2   :  { %39 = vperm.xlu0 %475, %v30_v1   ;;  %45 = vperm.xlu1 %476, %v32_v2   ;;  %v34_v3 = vld [vmem:[%s939_s0 + $0x20] sm:$0xff]  ;;  %v100_v5 = vld [vmem:[%s940_s2 + $0x70] sm:$0xff]  ;;  %v561_v6 = vld [vmem:[%s941_s3 + $0x78] sm:$0xff]  ;;  %v780_v42 = vand.u32 127, %v28_v41 }
   0x3   :  { %477 = vset.pattern.permute.xlu2 %v496_v0  ;;  %106 = vmatpush.msra.mxu0 %v101_v4  ;;  %v566_v7 = vld [vmem:[%s941_s3 + $0x70] sm:$0xff]  ;;  %v99_v8 = vld [vmem:[%s940_s2 + $0x68] sm:$0xff]  ;;  %v33_v11 = vld [vmem:[%s939_s0 + $0x18] sm:$0xff] }
   0x4   :  { %51 = vperm.xlu2 %477, %v34_v3   ;;  %173 = vmatpush.msra.mxu1 %v561_v6  ;;  %v576_v9 = vld [vmem:[%s941_s3 + $0x68] sm:$0xff]  ;;  %v98_v12 = vld [vmem:[%s940_s2 + $0x60] sm:$0xff]  ;;  %v97_v15 = vld [vmem:[%s940_s2 + $0x58] sm:$0xff] }
   0x5   :  { %198 = vmatpush.msra.mxu3 %v561_v6  ;;  %107 = vmatpush.msra.mxu0 %v100_v5  ;;  %v31_v10 = vld [vmem:[%s939_s0 + $0x8] sm:$0xff]  ;;  %v593_v13 = vld [vmem:[%s941_s3 + $0x60] sm:$0xff]  ;;  %v607_v16 = vld [vmem:[%s941_s3 + $0x58] sm:$0xff] }
   0x6   :  { %273 = vmatpush.msra.mxu2 %v561_v6  ;;  %174 = vmatpush.msra.mxu1 %v566_v7  ;;  %v35_v14 = vld [vmem:[%s939_s0 + $0x28] sm:$0xff]  ;;  %v96_v17 = vld [vmem:[%s940_s2 + $0x50] sm:$0xff]  ;;  %v94_v22 = vld [vmem:[%s940_s2 + $0x40] sm:$0xff] }
   0x7   :  { %199 = vmatpush.msra.mxu3 %v566_v7  ;;  %108 = vmatpush.msra.mxu0 %v99_v8  ;;  %v616_v18 = vld [vmem:[%s941_s3 + $0x50] sm:$0xff]  ;;  %v95_v19 = vld [vmem:[%s940_s2 + $0x48] sm:$0xff]  ;;  %v640_v23 = vld [vmem:[%s941_s3 + $0x40] sm:$0xff] }
   0x8   :  { %274 = vmatpush.msra.mxu2 %v566_v7  ;;  %175 = vmatpush.msra.mxu1 %v576_v9  ;;  %v626_v20 = vld [vmem:[%s941_s3 + $0x48] sm:$0xff]  ;;  %v36_v21 = vld [vmem:[%s939_s0 + $0x30] sm:$0xff]  ;;  %v93_v24 = vld [vmem:[%s940_s2 + $0x38] sm:$0xff] }
   0x9   :  { %200 = vmatpush.msra.mxu3 %v576_v9  ;;  %109 = vmatpush.msra.mxu0 %v98_v12  ;;  %v651_v25 = vld [vmem:[%s941_s3 + $0x38] sm:$0xff]  ;;  %v92_v26 = vld [vmem:[%s940_s2 + $0x30] sm:$0xff]  ;;  %v91_v28 = vld [vmem:[%s940_s2 + $0x28] sm:$0xff] }
   0xa   :  { %42 = vperm.xlu0 %475, %v31_v10   ;;  %48 = vperm.xlu1 %476, %v33_v11   ;;  %v661_v27 = vld [vmem:[%s941_s3 + $0x30] sm:$0xff]  ;;  %v672_v29 = vld [vmem:[%s941_s3 + $0x28] sm:$0xff]  ;;  %v90_v30 = vld [vmem:[%s940_s2 + $0x20] sm:$0xff] }
   0xb   :  { %176 = vmatpush.msra.mxu1 %v593_v13  ;;  %201 = vmatpush.msra.mxu3 %v593_v13  ;;  %v683_v31 = vld [vmem:[%s941_s3 + $0x20] sm:$0xff]  ;;  %v89_v32 = vld [vmem:[%s940_s2 + $0x18] sm:$0xff]  ;;  %v88_v34 = vld [vmem:[%s940_s2 + $0x10] sm:$0xff] }
   0xc   :  { %54 = vperm.xlu2 %477, %v35_v14   ;;  %110 = vmatpush.msra.mxu0 %v97_v15  ;;  %v694_v33 = vld [vmem:[%s941_s3 + $0x18] sm:$0xff]  ;;  %v705_v35 = vld [vmem:[%s941_s3 + $0x10] sm:$0xff]  ;;  %v87_v36 = vld [vmem:[%s940_s2 + $0x8] sm:$0xff] }
   0xd   :  { %177 = vmatpush.msra.mxu1 %v607_v16  ;;  %202 = vmatpush.msra.mxu3 %v607_v16  ;;  %v86_v37 = vld [vmem:[%s940_s2] sm:$0xff]  ;;  %v727_v38 = vld [vmem:[%s941_s3 + $0x8] sm:$0xff]  ;;  %v37_v56 = vld [vmem:[%s939_s0 + $0x38] sm:$0xff] }
   0xe   :  { %275 = vmatpush.msra.mxu2 %v576_v9  ;;  %111 = vmatpush.msra.mxu0 %v96_v17  ;;  %v733_v39 = vld [vmem:[%s941_s3] sm:$0xff]  ;;  %v395_v0 = vld [vmem:[%s944_s5 + $0x78] sm:$0xff]  ;;  %v394_v1 = vld [vmem:[%s944_s5 + $0x70] sm:$0xff] }
   0xf   :  { %178 = vmatpush.msra.mxu1 %v616_v18  ;;  %203 = vmatpush.msra.mxu3 %v616_v18  ;;  %v171_v40 = vld [vmem:[%s943_s1] sm:$0xff]  ;;  %v393_v2 = vld [vmem:[%s944_s5 + $0x68] sm:$0xff]  ;;  %v391_v4 = vld [vmem:[%s944_s5 + $0x58] sm:$0xff] }
  0x10   :  { %276 = vmatpush.msra.mxu2 %v593_v13  ;;  %112 = vmatpush.msra.mxu0 %v95_v19  ;;  %v826_v51 = vld [vmem:[%s942_s4] ss:$0 sm:$0xff]  ;;  %v390_v5 = vld [vmem:[%s944_s5 + $0x50] sm:$0xff]  ;;  %v385_v15 = vld [vmem:[%s944_s5 + $0x28] sm:$0xff] }
  0x11   :  { %179 = vmatpush.msra.mxu1 %v626_v20  ;;  %204 = vmatpush.msra.mxu3 %v626_v20  ;;  %v392_v3 = vld [vmem:[%s944_s5 + $0x60] sm:$0xff]  ;;  %v386_v14 = vld [vmem:[%s944_s5 + $0x30] sm:$0xff]  ;;  %v383_v17 = vld [vmem:[%s944_s5 + $0x18] sm:$0xff] }
  0x12   :  { %57 = vperm.xlu0 %475, %v36_v21   ;;  %113 = vmatpush.msra.mxu0 %v94_v22  ;;  %v388_v12 = vld [vmem:[%s944_s5 + $0x40] sm:$0xff]  ;;  %v381_v19 = vld [vmem:[%s944_s5 + $0x8] sm:$0xff] }
  0x13   :  { %180 = vmatpush.msra.mxu1 %v640_v23  ;;  %205 = vmatpush.msra.mxu3 %v640_v23 }
  0x14   :  { %277 = vmatpush.msra.mxu2 %v607_v16  ;;  %114 = vmatpush.msra.mxu0 %v93_v24 }
  0x15   :  { %181 = vmatpush.msra.mxu1 %v651_v25  ;;  %206 = vmatpush.msra.mxu3 %v651_v25 }
  0x16   :  { %278 = vmatpush.msra.mxu2 %v616_v18  ;;  %115 = vmatpush.msra.mxu0 %v92_v26 }
  0x17   :  { %182 = vmatpush.msra.mxu1 %v661_v27  ;;  %207 = vmatpush.msra.mxu3 %v661_v27 }
  0x18   :  { %279 = vmatpush.msra.mxu2 %v626_v20  ;;  %116 = vmatpush.msra.mxu0 %v91_v28 }
  0x19   :  { %183 = vmatpush.msra.mxu1 %v672_v29  ;;  %208 = vmatpush.msra.mxu3 %v672_v29 }
  0x1a   :  { %280 = vmatpush.msra.mxu2 %v640_v23  ;;  %117 = vmatpush.msra.mxu0 %v90_v30  ;;  %v479_v30 = vld [vmem:[%s945_s6] ss:$0 sm:$0xff] }
  0x1b   :  { %184 = vmatpush.msra.mxu1 %v683_v31  ;;  %209 = vmatpush.msra.mxu3 %v683_v31 }
  0x1c   :  { %281 = vmatpush.msra.mxu2 %v651_v25  ;;  %118 = vmatpush.msra.mxu0 %v89_v32 }
  0x1d   :  { %185 = vmatpush.msra.mxu1 %v694_v33  ;;  %210 = vmatpush.msra.mxu3 %v694_v33 }
  0x1e   :  { %282 = vmatpush.msra.mxu2 %v661_v27  ;;  %119 = vmatpush.msra.mxu0 %v88_v34 }
  0x1f   :  { %186 = vmatpush.msra.mxu1 %v705_v35  ;;  %211 = vmatpush.msra.mxu3 %v705_v35 }
  0x20   :  { %283 = vmatpush.msra.mxu2 %v672_v29  ;;  %120 = vmatpush.msra.mxu0 %v87_v36 }
  0x21   :  { %187 = vmatpush.msra.mxu1 %v727_v38  ;;  %212 = vmatpush.msra.mxu3 %v727_v38 }
  0x22   :  { %284 = vmatpush.msra.mxu2 %v683_v31  ;;  %121 = vmatpush.msra.mxu0 %v86_v37 }
  0x23   :  { %188 = vmatpush.msra.mxu1 %v733_v39  ;;  %213 = vmatpush.msra.mxu3 %v733_v39 }
  0x24   :  { %285 = vmatpush.msra.mxu2 %v694_v33  ;;  %323 = vmatpush.msrb.mxu0 %v561_v6 }
  0x25   :  { %189 = vmatmul.f32.vlgmr.msra.gmra.mxu1 %v171_v40  ;;  %223 = vmatpush.msrb.mxu3 %v561_v6 }
  0x26   :  { %286 = vmatpush.msra.mxu2 %v705_v35  ;;  %248 = vmatpush.msrb.mxu1 %v561_v6 }
  0x27   :  { %324 = vmatpush.msrb.mxu0 %v566_v7  ;;  %224 = vmatpush.msrb.mxu3 %v566_v7 }
  0x28   :  { %287 = vmatpush.msra.mxu2 %v727_v38  ;;  %249 = vmatpush.msrb.mxu1 %v566_v7 }
  0x29   :  { %325 = vmatpush.msrb.mxu0 %v576_v9  ;;  %225 = vmatpush.msrb.mxu3 %v576_v9 }
  0x2a   :  { %288 = vmatpush.msra.mxu2 %v733_v39  ;;  %250 = vmatpush.msrb.mxu1 %v576_v9 }
  0x2b   :  { %326 = vmatpush.msrb.mxu0 %v593_v13  ;;  %226 = vmatpush.msrb.mxu3 %v593_v13 }
  0x2c   :  { %251 = vmatpush.msrb.mxu1 %v593_v13  ;;  %60 = vperm.xlu1 %476, %v37_v56  }
  0x2d   :  { %327 = vmatpush.msrb.mxu0 %v607_v16  ;;  %227 = vmatpush.msrb.mxu3 %v607_v16 }
  0x2e   :  { %252 = vmatpush.msrb.mxu1 %v607_v16  ;;  %400 = vmatpush.msrb.mxu2 %v395_v0 }
  0x2f   :  { %328 = vmatpush.msrb.mxu0 %v616_v18  ;;  %228 = vmatpush.msrb.mxu3 %v616_v18 }
  0x30   :  { %253 = vmatpush.msrb.mxu1 %v616_v18  ;;  %401 = vmatpush.msrb.mxu2 %v394_v1 }
  0x31   :  { %329 = vmatpush.msrb.mxu0 %v626_v20  ;;  %229 = vmatpush.msrb.mxu3 %v626_v20 }
  0x32   :  { %254 = vmatpush.msrb.mxu1 %v626_v20  ;;  %402 = vmatpush.msrb.mxu2 %v393_v2 }
  0x33   :  { %330 = vmatpush.msrb.mxu0 %v640_v23  ;;  %230 = vmatpush.msrb.mxu3 %v640_v23 }
  0x34   :  { %255 = vmatpush.msrb.mxu1 %v640_v23  ;;  %403 = vmatpush.msrb.mxu2 %v392_v3 }
  0x35   :  { %331 = vmatpush.msrb.mxu0 %v651_v25  ;;  %231 = vmatpush.msrb.mxu3 %v651_v25 }
  0x36   :  { %256 = vmatpush.msrb.mxu1 %v651_v25  ;;  %404 = vmatpush.msrb.mxu2 %v391_v4 }
  0x37   :  { %332 = vmatpush.msrb.mxu0 %v661_v27  ;;  %232 = vmatpush.msrb.mxu3 %v661_v27 }
  0x38   :  { %257 = vmatpush.msrb.mxu1 %v661_v27  ;;  %405 = vmatpush.msrb.mxu2 %v390_v5 }
  0x39   :  { %333 = vmatpush.msrb.mxu0 %v672_v29  ;;  %233 = vmatpush.msrb.mxu3 %v672_v29 }
  0x3a   :  { %258 = vmatpush.msrb.mxu1 %v672_v29 }
  0x3b   :  { %334 = vmatpush.msrb.mxu0 %v683_v31  ;;  %234 = vmatpush.msrb.mxu3 %v683_v31 }
  0x3c   :  { %259 = vmatpush.msrb.mxu1 %v683_v31 }
  0x3d   :  { %335 = vmatpush.msrb.mxu0 %v694_v33  ;;  %235 = vmatpush.msrb.mxu3 %v694_v33 }
  0x3e   :  { %260 = vmatpush.msrb.mxu1 %v694_v33 }
  0x3f   :  { %336 = vmatpush.msrb.mxu0 %v705_v35  ;;  %236 = vmatpush.msrb.mxu3 %v705_v35 }
  0x40   :  { %261 = vmatpush.msrb.mxu1 %v705_v35 }
  0x41   :  { %337 = vmatpush.msrb.mxu0 %v727_v38  ;;  %237 = vmatpush.msrb.mxu3 %v727_v38 }
  0x42   :  { %262 = vmatpush.msrb.mxu1 %v727_v38 }
  0x43   :  { %238 = vmatpush.msrb.mxu3 %v733_v39  ;;  %338 = vmatpush.msrb.mxu0 %v733_v39 }
  0x44   :  { %263 = vmatpush.msrb.mxu1 %v733_v39 }
  0x46   :  { %348 = vmatpush.msra.mxu1 %v561_v6 }
  0x48   :  { %349 = vmatpush.msra.mxu1 %v566_v7 }
  0x4a   :  { %350 = vmatpush.msra.mxu1 %v576_v9 }
  0x4c   :  { %351 = vmatpush.msra.mxu1 %v593_v13 }
  0x4e   :  { %352 = vmatpush.msra.mxu1 %v607_v16 }
  0x50   :  { %353 = vmatpush.msra.mxu1 %v616_v18 }
  0x52   :  { %354 = vmatpush.msra.mxu1 %v626_v20 }
  0x54   :  { %355 = vmatpush.msra.mxu1 %v640_v23 }
  0x56   :  { %356 = vmatpush.msra.mxu1 %v651_v25 }
  0x58   :  { %357 = vmatpush.msra.mxu1 %v661_v27 }
  0x5a   :  { %358 = vmatpush.msra.mxu1 %v672_v29 }
  0x5c   :  { %359 = vmatpush.msra.mxu1 %v683_v31 }
  0x5e   :  { %v52_v48 = vpop.permute.xlu2 %51  ;;  %360 = vmatpush.msra.mxu1 %v694_v33 }
  0x5f   :  { %vm66_vm4 = vcmp.eq.s32.totalorder %v780_v42, %v52_v48 }
  0x60   :  { %361 = vmatpush.msra.mxu1 %v705_v35 }
  0x62   :  { %362 = vmatpush.msra.mxu1 %v727_v38 }
  0x64   :  { %363 = vmatpush.msra.mxu1 %v733_v39 }
  0x66   :  { %v55_v49 = vpop.permute.xlu2 %54 }
  0x67   :  { %vm67_vm5 = vcmp.eq.s32.totalorder %v780_v42, %v55_v49 }
  0x74   :  { %v40_v43 = vpop.permute.xlu0 %39  ;;  %v46_v46 = vpop.permute.xlu1 %45 }
  0x75   :  { %vm62_vm0 = vcmp.eq.s32.totalorder %v780_v42, %v40_v43  ;;  %vm64_vm2 = vcmp.eq.s32.totalorder %v780_v42, %v46_v46 }
  0x76   :  { %465 = vmatmul.msk.f32.vlgmr.msra.gmra.mxu0 %vm62_vm0, %v497_v44 }
  0x7c   :  { %v43_v45 = vpop.permute.xlu0 %42  ;;  %v49_v47 = vpop.permute.xlu1 %48 }
  0x7d   :  { %vm63_vm1 = vcmp.eq.s32.totalorder %v780_v42, %v43_v45  ;;  %vm65_vm3 = vcmp.eq.s32.totalorder %v780_v42, %v49_v47 }
  0x7e   :  { %466 = vmatmul.msk.f32.gmra.mxu0 %vm63_vm1, %v497_v44 }
  0x84   :  { %v58_v50 = vpop.permute.xlu0 %57 }
  0x85   :  { %vm68_vm6 = vcmp.eq.s32.totalorder %v780_v42, %v58_v50 }
  0x86   :  { %467 = vmatmul.msk.f32.gmra.mxu0 %vm64_vm2, %v497_v44 }
  0x8e   :  { %468 = vmatmul.msk.f32.gmra.mxu0 %vm65_vm3, %v497_v44 }
  0x96   :  { %469 = vmatmul.msk.f32.gmra.mxu0 %vm66_vm4, %v497_v44 }
  0x9e   :  { %470 = vmatmul.msk.f32.gmra.mxu0 %vm67_vm5, %v497_v44  ;;  %v61_v58 = vpop.permute.xlu1 %60 }
  0x9f   :  { %vm69_vm7 = vcmp.eq.s32.totalorder %v780_v42, %v61_v58 }
  0xa2   :  { %v190_v53 = vpop.f32.mrf.mxu1 }
  0xa6   :  { %471 = vmatmul.msk.f32.gmra.mxu0 %vm68_vm6, %v497_v44 }
  0xae   :  { %472 = vmatmul.msk.f32.gmra.mxu0 %vm69_vm7, %v497_v44 }
  0xf3   :  { %v123_v52 = vpop.f32.mrf.mxu0 }
  0xf4   :  { %v124_v54 = vadd.f32 %v826_v51, %v123_v52 }
  0xf6   :  { %v193_v55 = vadd.f32 %v190_v53, %v124_v54 }
  0xf8   :  { %480 = vtanh.f32 %v193_v55 }
  0xfb   :  { %v126_v59 = vpop.f32.mrf.mxu0 }
  0xfc   :  { %v127_v60 = vadd.f32 %v826_v51, %v126_v59 }
  0xfe   :  { %v832_v57 = vpop.eup %480 }
  0xff   :  { %214 = vmatmul.f32.vlgmr.msra.gmra.mxu3 %v832_v57 }
 0x100   :  { %298 = vmatpush.msra.mxu3 %v561_v6  ;;  %v389_v6 = vld [vmem:[%s944_s5 + $0x48] sm:$0xff] }
 0x101   :  { %406 = vmatpush.msrb.mxu2 %v389_v6 }
 0x102   :  { %299 = vmatpush.msra.mxu3 %v566_v7 }
 0x103   :  { %v129_v7 = vpop.f32.mrf.mxu0  ;;  %407 = vmatpush.msrb.mxu2 %v388_v12 }
 0x104   :  { %300 = vmatpush.msra.mxu3 %v576_v9  ;;  %v130_v8 = vadd.f32 %v826_v51, %v129_v7 }
 0x106   :  { %301 = vmatpush.msra.mxu3 %v593_v13  ;;  %v387_v13 = vld [vmem:[%s944_s5 + $0x38] sm:$0xff] }
 0x107   :  { %408 = vmatpush.msrb.mxu2 %v387_v13 }
 0x108   :  { %302 = vmatpush.msra.mxu3 %v607_v16  ;;  %v384_v16 = vld [vmem:[%s944_s5 + $0x20] sm:$0xff] }
 0x109   :  { %409 = vmatpush.msrb.mxu2 %v386_v14 }
 0x10a   :  { %303 = vmatpush.msra.mxu3 %v616_v18  ;;  %v382_v18 = vld [vmem:[%s944_s5 + $0x10] sm:$0xff] }
 0x10b   :  { %410 = vmatpush.msrb.mxu2 %v385_v15  ;;  %v132_v21 = vpop.f32.mrf.mxu0 }
 0x10c   :  { %304 = vmatpush.msra.mxu3 %v626_v20  ;;  %v380_v20 = vld [vmem:[%s944_s5] sm:$0xff]  ;;  %v133_v22 = vadd.f32 %v826_v51, %v132_v21 }
 0x10d   :  { %411 = vmatpush.msrb.mxu2 %v384_v16 }
 0x10e   :  { %305 = vmatpush.msra.mxu3 %v640_v23 }
 0x10f   :  { %412 = vmatpush.msrb.mxu2 %v383_v17 }
 0x110   :  { %306 = vmatpush.msra.mxu3 %v651_v25 }
 0x111   :  { %413 = vmatpush.msrb.mxu2 %v382_v18 }
 0x112   :  { %307 = vmatpush.msra.mxu3 %v661_v27 }
 0x113   :  { %414 = vmatpush.msrb.mxu2 %v381_v19  ;;  %v135_v26 = vpop.f32.mrf.mxu0 }
 0x114   :  { %308 = vmatpush.msra.mxu3 %v672_v29  ;;  %v136_v27 = vadd.f32 %v826_v51, %v135_v26 }
 0x115   :  { %415 = vmatpush.msrb.mxu2 %v380_v20 }
 0x116   :  { %309 = vmatpush.msra.mxu3 %v683_v31 }
 0x118   :  { %310 = vmatpush.msra.mxu3 %v694_v33 }
 0x11a   :  { %311 = vmatpush.msra.mxu3 %v705_v35 }
 0x11b   :  { %v138_v40 = vpop.f32.mrf.mxu0 }
 0x11c   :  { %312 = vmatpush.msra.mxu3 %v727_v38  ;;  %v139_v41 = vadd.f32 %v826_v51, %v138_v40 }
 0x11e   :  { %313 = vmatpush.msra.mxu3 %v733_v39 }
 0x123   :  { %v141_v47 = vpop.f32.mrf.mxu0 }
 0x124   :  { %v142_v49 = vadd.f32 %v826_v51, %v141_v47 }
 0x12b   :  { %v144_v48 = vpop.f32.mrf.mxu0 }
 0x12c   :  { %v145_v56 = vadd.f32 %v826_v51, %v144_v48 }
 0x182   :  { %v215_v61 = vpop.f32.mrf.mxu3 }
 0x183   :  { %v218_v62 = vadd.f32 %v215_v61, %v127_v60 }
 0x185   :  { %482 = vtanh.f32 %v218_v62 }
 0x18b   :  { %v483_v63 = vpop.eup %482 }
 0x18c   :  { %239 = vmatmul.f32.vlgmr.msrb.gmra.mxu3 %v483_v63 }
 0x20f   :  { %v240_v9 = vpop.f32.mrf.mxu3 }
 0x210   :  { %v243_v10 = vadd.f32 %v240_v9, %v130_v8 }
 0x212   :  { %484 = vtanh.f32 %v243_v10 }
 0x218   :  { %v485_v11 = vpop.eup %484 }
 0x219   :  { %264 = vmatmul.f32.vlgmr.msrb.gmra.mxu1 %v485_v11 }
 0x296   :  { %v265_v23 = vpop.f32.mrf.mxu1 }
 0x297   :  { %v268_v24 = vadd.f32 %v265_v23, %v133_v22 }
 0x299   :  { %486 = vtanh.f32 %v268_v24 }
 0x29f   :  { %v487_v25 = vpop.eup %486 }
 0x2a0   :  { %289 = vmatmul.f32.vlgmr.msra.gmra.mxu2 %v487_v25 }
 0x2a8   :  { %416 = vmatmul.f32.vlgmr.msrb.gmra.mxu2 %v832_v57 }
 0x2b0   :  { %419 = vmatmul.f32.gmra.mxu2 %v483_v63 }
 0x2b8   :  { %422 = vmatmul.f32.gmra.mxu2 %v485_v11 }
 0x2c0   :  { %425 = vmatmul.f32.gmra.mxu2 %v487_v25 }
 0x323   :  { %v290_v28 = vpop.f32.mrf.mxu2 }
 0x324   :  { %v293_v29 = vadd.f32 %v290_v28, %v136_v27 }
 0x326   :  { %488 = vtanh.f32 %v293_v29 }
 0x32b   :  { %v417_v31 = vpop.f32.mrf.mxu2 }
 0x32c   :  { %v489_v32 = vpop.eup %488  ;;  %v418_v33 = vadd.f32 %v479_v30, %v417_v31 }
 0x32d   :  { %314 = vmatmul.f32.vlgmr.msra.gmra.mxu3 %v489_v32  ;;  %428 = vmatmul.f32.gmra.mxu2 %v489_v32 }
 0x32e   :  { %441 = vst [vmem:[%s946_s7] sm:$0xff] %v418_v33 }
 0x333   :  { %v420_v34 = vpop.f32.mrf.mxu2 }
 0x334   :  { %v421_v35 = vadd.f32 %v479_v30, %v420_v34 }
 0x336   :  { %442 = vst [vmem:[%s946_s7 + $0x8] sm:$0xff] %v421_v35 }
 0x33b   :  { %v423_v36 = vpop.f32.mrf.mxu2 }
 0x33c   :  { %v424_v37 = vadd.f32 %v479_v30, %v423_v36 }
 0x33e   :  { %443 = vst [vmem:[%s946_s7 + $0x10] sm:$0xff] %v424_v37 }
 0x343   :  { %v426_v38 = vpop.f32.mrf.mxu2 }
 0x344   :  { %v427_v39 = vadd.f32 %v479_v30, %v426_v38 }
 0x346   :  { %444 = vst [vmem:[%s946_s7 + $0x18] sm:$0xff] %v427_v39 }
 0x3b0   :  { %v315_v42 = vpop.f32.mrf.mxu3  ;;  %v429_v43 = vpop.f32.mrf.mxu2 }
 0x3b1   :  { %v318_v44 = vadd.f32 %v315_v42, %v139_v41  ;;  %v430_v45 = vadd.f32 %v479_v30, %v429_v43 }
 0x3b3   :  { %490 = vtanh.f32 %v318_v44  ;;  %445 = vst [vmem:[%s946_s7 + $0x20] sm:$0xff] %v430_v45 }
 0x3b9   :  { %v491_v46 = vpop.eup %490 }
 0x3ba   :  { %339 = vmatmul.f32.vlgmr.msrb.gmra.mxu0 %v491_v46  ;;  %431 = vmatmul.f32.gmra.mxu2 %v491_v46 }
 0x437   :  { %v340_v50 = vpop.f32.mrf.mxu0 }
 0x438   :  { %v343_v52 = vadd.f32 %v340_v50, %v142_v49 }
 0x43a   :  { %492 = vtanh.f32 %v343_v52 }
 0x43d   :  { %v432_v53 = vpop.f32.mrf.mxu2 }
 0x43e   :  { %v433_v54 = vadd.f32 %v479_v30, %v432_v53 }
 0x440   :  { %v493_v55 = vpop.eup %492  ;;  %446 = vst [vmem:[%s946_s7 + $0x28] sm:$0xff] %v433_v54 }
 0x441   :  { %364 = vmatmul.f32.vlgmr.msra.gmra.mxu1 %v493_v55  ;;  %434 = vmatmul.f32.gmra.mxu2 %v493_v55 }
 0x4be   :  { %v365_v57 = vpop.f32.mrf.mxu1 }
 0x4bf   :  { %v368_v58 = vadd.f32 %v365_v57, %v145_v56 }
 0x4c1   :  { %494 = vtanh.f32 %v368_v58 }
 0x4c4   :  { %v435_v59 = vpop.f32.mrf.mxu2 }
 0x4c5   :  { %v436_v60 = vadd.f32 %v479_v30, %v435_v59 }
 0x4c7   :  { %v495_v61 = vpop.eup %494  ;;  %447 = vst [vmem:[%s946_s7 + $0x30] sm:$0xff] %v436_v60 }
 0x4c8   :  { %371 = vst [vmem:[%s947_s8] sm:$0xff] %v495_v61  ;;  %437 = vmatmul.f32.gmra.mxu2 %v495_v61 }
 0x54b   :  { %v438_v62 = vpop.f32.mrf.mxu2 }
 0x54c   :  { %v439_v63 = vadd.f32 %v479_v30, %v438_v62 }
 0x54e   :  { %448 = vst [vmem:[%s946_s7 + $0x38] sm:$0xff] %v439_v63 }

</bundles_post_ra>
